<compile_context>
chip_gen: v6e
topology: v6e:2x2x1
jax: 0.10.0
libtpu: 0.0.40
codegen_flags: <defaults>
</compile_context>

<pallas_src>
import functools

import jax
import jax.numpy as jnp
from jax.experimental import pallas as pl
from jax.experimental.pallas import tpu as pltpu


_LANES = 128  # TPU lane width


def _round_up(v, m):
    return ((v + m - 1) // m) * m


@functools.lru_cache(maxsize=None)
def _vmem_capacity_bytes():
    """Per-TensorCore VMEM capacity; conservative fallback = v7x's 64 MiB."""
    try:
        return int(pltpu.get_tpu_info().vmem_capacity_bytes)
    except Exception:
        return 64 * 1024 * 1024


@functools.lru_cache(maxsize=None)
def _num_tensorcores():
    """TensorCores a 'parallel' grid axis can shard over (2 on v7x, else 1)."""
    try:
        kind = jax.devices()[0].device_kind.lower()
    except Exception:
        return 1
    return 2 if "v7" in kind else 1


def _disc_cdan_kernel(x_ref, w1_ref, b1_ref, w2_ref, b2_ref, w3_ref, b3_ref,
                      o_ref):
    """Fused 3-layer MLP: relu(x@W1+b1) @ W2+b2 -> relu -> @ W3+b3."""
    x = x_ref[...]

    h1 = jnp.dot(x, w1_ref[...], preferred_element_type=jnp.float32)
    h1 = jnp.maximum(h1 + b1_ref[...], 0.0)

    h2 = jnp.dot(h1.astype(w2_ref.dtype), w2_ref[...],
                 preferred_element_type=jnp.float32)
    h2 = jnp.maximum(h2 + b2_ref[...], 0.0)

    h3 = jnp.dot(h2.astype(w3_ref.dtype), w3_ref[...],
                 preferred_element_type=jnp.float32)
    o_ref[...] = (h3 + b3_ref[...]).astype(o_ref.dtype)


@functools.partial(jax.jit, static_argnames=("block_b", "use_bf16"))
def discriminator_cdan_forward(x, params, *, block_b=4096, use_bf16=False):
    """Forward pass of Discriminator_CDAN.

    x:       (B, D) float32
    params:  dict with w1 (D,64), b1 (64,), w2 (64,64), b2 (64,),
             w3 (64,2), b3 (2,)   (weights already in (in, out) layout)
    returns: (B, 2) float32 logits
    """
    B, D = x.shape
    H = params["w1"].shape[1]        # 64
    C = params["w3"].shape[1]        # 2

    in_dtype = jnp.bfloat16 if use_bf16 else jnp.float32
    itemsize = jnp.dtype(in_dtype).itemsize

    x_in = x.astype(in_dtype)
    w1 = params["w1"].astype(in_dtype)
    w2 = params["w2"].astype(in_dtype)
    w3 = params["w3"].astype(in_dtype)
    # Biases as (1, n) rows so they broadcast over the batch tile in-kernel
    # (bias adds always done in f32).
    b1 = params["b1"].reshape(1, H).astype(jnp.float32)
    b2 = params["b2"].reshape(1, H).astype(jnp.float32)
    b3 = params["b3"].reshape(1, C).astype(jnp.float32)

    # --- generation-aware VMEM budgeting ----------------------------------
    vmem_cap = _vmem_capacity_bytes()            # 64 MiB v7x, 128 MiB v5e/v6e
    vmem_limit = int(0.65 * vmem_cap)

    lane_pad = lambda n: _round_up(max(int(n), 1), _LANES)
    # Per batch-row VMEM: double-buffered x tile + double-buffered out tile
    # (lane-padded in VMEM) + the two lane-padded f32 intermediates (h1/h2).
    per_row_bytes = (2 * lane_pad(D) * itemsize
                     + 2 * lane_pad(C) * 4
                     + 2 * lane_pad(H) * 4)
    # Weights/biases are grid-invariant but still double-buffered by default.
    weight_bytes = 2 * (lane_pad(H) * (D + H) * itemsize
                        + lane_pad(C) * H * itemsize
                        + (2 * lane_pad(H) + lane_pad(C)) * 4)
    x_budget = int(0.4 * vmem_cap) - weight_bytes

    # --- batch tile selection ----------------------------------------------
    tb_cap = max(8, (max(x_budget, 0) // per_row_bytes) // 8 * 8)
    tb = min(block_b, tb_cap)
    tb = max(8, (tb // 8) * 8)       # multiple of 8 sublanes
    if tb >= B:
        cores = _num_tensorcores()
        if cores > 1 and B >= 2 * 8:
            # Multi-TC chip (v7x): split into `cores` balanced blocks so both
            # TensorCores get work.  Single-TC chips take the whole batch.
            tb = _round_up(pl.cdiv(B, cores), 8)
        else:
            tb = B                   # full-extent block (allowed even if < 8)
    grid = (pl.cdiv(B, tb),)

    # Weights / biases are small -> full-array blocks, resident across the grid.
    full2d = lambda shape: pl.BlockSpec(shape, lambda i: (0, 0))

    flops = 2 * B * (D * H + H * H + H * C)
    bytes_accessed = (itemsize * (B * D + D * H + H * H + H * C)
                      + 4 * (B * C + 2 * H + C))

    out = pl.pallas_call(
        _disc_cdan_kernel,
        out_shape=jax.ShapeDtypeStruct((B, C), jnp.float32),
        grid_spec=pltpu.PrefetchScalarGridSpec(
            num_scalar_prefetch=0,
            grid=grid,
            in_specs=[
                pl.BlockSpec((tb, D), lambda i: (i, 0)),   # x tile (streamed)
                full2d((D, H)),                            # w1
                full2d((1, H)),                            # b1
                full2d((H, H)),                            # w2
                full2d((1, H)),                            # b2
                full2d((H, C)),                            # w3
                full2d((1, C)),                            # b3
            ],
            out_specs=pl.BlockSpec((tb, C), lambda i: (i, 0)),
        ),
        compiler_params=pltpu.CompilerParams(
            dimension_semantics=("parallel",),
            vmem_limit_bytes=vmem_limit,
        ),
        cost_estimate=pl.CostEstimate(
            flops=flops, transcendentals=0, bytes_accessed=bytes_accessed),
    )(x_in, w1, b1, w2, b2, w3, b3)

    return out


def init_params(key, in_dim, hidden=64, num_out=2):
    """Deterministic init mimicking torch.nn.Linear default U[-1/sqrt(fan_in), +]."""
    ks = jax.random.split(key, 6)

    def linear(kw, kb, fan_in, fan_out):
        bound = 1.0 / jnp.sqrt(fan_in)
        w = jax.random.uniform(kw, (fan_in, fan_out), jnp.float32, -bound, bound)
        b = jax.random.uniform(kb, (fan_out,), jnp.float32, -bound, bound)
        return w, b

    w1, b1 = linear(ks[0], ks[1], in_dim, hidden)
    w2, b2 = linear(ks[2], ks[3], hidden, hidden)
    w3, b3 = linear(ks[4], ks[5], hidden, num_out)
    return {"w1": w1, "b1": b1, "w2": w2, "b2": b2, "w3": w3, "b3": b3}


def reference_forward(x, p):
    h1 = jnp.maximum(x @ p["w1"] + p["b1"], 0.0)
    h2 = jnp.maximum(h1 @ p["w2"] + p["b2"], 0.0)
    return h2 @ p["w3"] + p["b3"]


if __name__ == "__main__":
    # configs: feature_length=16, output_channels=4, num_class=2 -> D = 128
    feature_length, output_channels, num_class = 16, 4, 2
    D = feature_length * output_channels * num_class
    B = 64   # small demo batch

    key = jax.random.PRNGKey(0)
    kx, kp = jax.random.split(key)
    x = jax.random.normal(kx, (B, D), jnp.float32)
    params = init_params(kp, D)

    out = discriminator_cdan_forward(x, params)
    out = jax.block_until_ready(out)

    ref = reference_forward(x, params)
    assert out.shape == (B, 2), out.shape
    assert jnp.allclose(out, ref, atol=1e-5, rtol=1e-5), "mismatch vs reference"

    print("KERNEL_OK")
</pallas_src>

<mosaic_0001>
module attributes {stable_mosaic.version = 11 : i64} {
  func.func @_disc_cdan_kernel(%arg0: i32, %arg1: memref<64x128xf32, #tpu.memory_space<vmem>>, %arg2: memref<128x64xf32, #tpu.memory_space<vmem>>, %arg3: memref<1x64xf32, #tpu.memory_space<vmem>>, %arg4: memref<64x64xf32, #tpu.memory_space<vmem>>, %arg5: memref<1x64xf32, #tpu.memory_space<vmem>>, %arg6: memref<64x2xf32, #tpu.memory_space<vmem>>, %arg7: memref<1x2xf32, #tpu.memory_space<vmem>>, %arg8: memref<64x2xf32, #tpu.memory_space<vmem>>) attributes {dimension_semantics = [#tpu.dimension_semantics<parallel>], iteration_bounds = array<i64: 1>, scalar_prefetch = 0 : i64, scratch_operands = 0 : i64, tpu.core_type = #tpu.core_type<tc>, window_params = [{transform_indices = @transform_0, window_bounds = array<i64: 64, 128>}, {pipeline_mode = #tpu.pipeline_mode<synchronous>, transform_indices = @transform_1, window_bounds = array<i64: 128, 64>}, {pipeline_mode = #tpu.pipeline_mode<synchronous>, transform_indices = @transform_2, window_bounds = array<i64: 1, 64>}, {pipeline_mode = #tpu.pipeline_mode<synchronous>, transform_indices = @transform_3, window_bounds = array<i64: 64, 64>}, {pipeline_mode = #tpu.pipeline_mode<synchronous>, transform_indices = @transform_4, window_bounds = array<i64: 1, 64>}, {pipeline_mode = #tpu.pipeline_mode<synchronous>, transform_indices = @transform_5, window_bounds = array<i64: 64, 2>}, {pipeline_mode = #tpu.pipeline_mode<synchronous>, transform_indices = @transform_6, window_bounds = array<i64: 1, 2>}, {transform_indices = @transform_7, window_bounds = array<i64: 64, 2>}]} {
    %c0 = arith.constant 0 : index
    %c0_0 = arith.constant 0 : index
    %0 = vector.load %arg1[%c0, %c0_0] : memref<64x128xf32, #tpu.memory_space<vmem>>, vector<64x128xf32>
    %c0_1 = arith.constant 0 : index
    %c0_2 = arith.constant 0 : index
    %1 = vector.load %arg2[%c0_1, %c0_2] : memref<128x64xf32, #tpu.memory_space<vmem>>, vector<128x64xf32>
    %cst = arith.constant dense<0.000000e+00> : vector<64x64xf32>
    %2 = tpu.matmul %0, %1, %cst {dimension_numbers = #tpu.dot_dimension_numbers<[1], [0], [0], [1], [0, 0, 1, 1], [], []>} : vector<64x128xf32>, vector<128x64xf32>, vector<64x64xf32> -> vector<64x64xf32>
    %c0_3 = arith.constant 0 : index
    %c0_4 = arith.constant 0 : index
    %3 = vector.load %arg3[%c0_3, %c0_4] : memref<1x64xf32, #tpu.memory_space<vmem>>, vector<1x64xf32>
    %4 = vector.broadcast %3 : vector<1x64xf32> to vector<64x64xf32>
    %5 = arith.addf %2, %4 : vector<64x64xf32>
    %cst_5 = arith.constant 0.000000e+00 : f32
    %6 = vector.broadcast %cst_5 : f32 to vector<64x64xf32>
    %7 = arith.maximumf %5, %6 : vector<64x64xf32>
    %c0_6 = arith.constant 0 : index
    %c0_7 = arith.constant 0 : index
    %8 = vector.load %arg4[%c0_6, %c0_7] : memref<64x64xf32, #tpu.memory_space<vmem>>, vector<64x64xf32>
    %cst_8 = arith.constant dense<0.000000e+00> : vector<64x64xf32>
    %9 = tpu.matmul %7, %8, %cst_8 {dimension_numbers = #tpu.dot_dimension_numbers<[1], [0], [0], [1], [0, 0, 1, 1], [], []>} : vector<64x64xf32>, vector<64x64xf32>, vector<64x64xf32> -> vector<64x64xf32>
    %c0_9 = arith.constant 0 : index
    %c0_10 = arith.constant 0 : index
    %10 = vector.load %arg5[%c0_9, %c0_10] : memref<1x64xf32, #tpu.memory_space<vmem>>, vector<1x64xf32>
    %11 = vector.broadcast %10 : vector<1x64xf32> to vector<64x64xf32>
    %12 = arith.addf %9, %11 : vector<64x64xf32>
    %cst_11 = arith.constant 0.000000e+00 : f32
    %13 = vector.broadcast %cst_11 : f32 to vector<64x64xf32>
    %14 = arith.maximumf %12, %13 : vector<64x64xf32>
    %c0_12 = arith.constant 0 : index
    %c0_13 = arith.constant 0 : index
    %15 = vector.load %arg6[%c0_12, %c0_13] : memref<64x2xf32, #tpu.memory_space<vmem>>, vector<64x2xf32>
    %cst_14 = arith.constant dense<0.000000e+00> : vector<64x2xf32>
    %16 = tpu.matmul %14, %15, %cst_14 {dimension_numbers = #tpu.dot_dimension_numbers<[1], [0], [0], [1], [0, 0, 1, 1], [], []>} : vector<64x64xf32>, vector<64x2xf32>, vector<64x2xf32> -> vector<64x2xf32>
    %c0_15 = arith.constant 0 : index
    %c0_16 = arith.constant 0 : index
    %17 = vector.load %arg7[%c0_15, %c0_16] : memref<1x2xf32, #tpu.memory_space<vmem>>, vector<1x2xf32>
    %18 = vector.broadcast %17 : vector<1x2xf32> to vector<64x2xf32>
    %19 = arith.addf %16, %18 : vector<64x2xf32>
    %c0_17 = arith.constant 0 : index
    %c0_18 = arith.constant 0 : index
    %20 = vector.load %arg8[%c0_17, %c0_18] : memref<64x2xf32, #tpu.memory_space<vmem>>, vector<64x2xf32>
    tpu.vector_store %arg8[%c0_17, %c0_18], %19 {strides = array<i32>} : memref<64x2xf32, #tpu.memory_space<vmem>>, vector<64x2xf32>,
    return
  }
  func.func @transform_0(%arg0: i32) -> (i32, i32) {
    %c0_i32 = arith.constant 0 : i32
    %c0_i32_0 = arith.constant 0 : i32
    return %arg0, %c0_i32 : i32, i32
  }
  func.func @transform_1(%arg0: i32) -> (i32, i32) {
    %c0_i32 = arith.constant 0 : i32
    %c0_i32_0 = arith.constant 0 : i32
    %c0_i32_1 = arith.constant 0 : i32
    return %c0_i32, %c0_i32_0 : i32, i32
  }
  func.func @transform_2(%arg0: i32) -> (i32, i32) {
    %c0_i32 = arith.constant 0 : i32
    %c0_i32_0 = arith.constant 0 : i32
    %c0_i32_1 = arith.constant 0 : i32
    return %c0_i32, %c0_i32_0 : i32, i32
  }
  func.func @transform_3(%arg0: i32) -> (i32, i32) {
    %c0_i32 = arith.constant 0 : i32
    %c0_i32_0 = arith.constant 0 : i32
    %c0_i32_1 = arith.constant 0 : i32
    return %c0_i32, %c0_i32_0 : i32, i32
  }
  func.func @transform_4(%arg0: i32) -> (i32, i32) {
    %c0_i32 = arith.constant 0 : i32
    %c0_i32_0 = arith.constant 0 : i32
    %c0_i32_1 = arith.constant 0 : i32
    return %c0_i32, %c0_i32_0 : i32, i32
  }
  func.func @transform_5(%arg0: i32) -> (i32, i32) {
    %c0_i32 = arith.constant 0 : i32
    %c0_i32_0 = arith.constant 0 : i32
    %c0_i32_1 = arith.constant 0 : i32
    return %c0_i32, %c0_i32_0 : i32, i32
  }
  func.func @transform_6(%arg0: i32) -> (i32, i32) {
    %c0_i32 = arith.constant 0 : i32
    %c0_i32_0 = arith.constant 0 : i32
    %c0_i32_1 = arith.constant 0 : i32
    return %c0_i32, %c0_i32_0 : i32, i32
  }
  func.func @transform_7(%arg0: i32) -> (i32, i32) {
    %c0_i32 = arith.constant 0 : i32
    %c0_i32_0 = arith.constant 0 : i32
    return %arg0, %c0_i32 : i32, i32
  }
}

</mosaic_0001>

<bundles_post_ra>
// kernel: discriminator_cdan_forward.1
= control target key start
LH: loop header
LB: loop body
LE: loop exit
PB: predicated region body
PF: predicated region fallthrough
CT: control target
= control target key end

     0   :  { %vm185_vm0 = vcmask 523264   ;;  %vm467_vm1 = vcmask 15360   ;;  %s872_s1 = inlined_call_operand.vmem [shape: f32[128,64], index: 1, kind: input, shape index: {}]   ;;  %s873_s0 = inlined_call_operand.vmem [shape: f32[64,128], index: 0, kind: input, shape index: {}]   ;;  %s874_s3 = inlined_call_operand.vmem [shape: f32[64,64], index: 3, kind: input, shape index: {}]   ;;  %s875_s5 = inlined_call_operand.vmem [shape: f32[64,2], index: 5, kind: input, shape index: {}]   ;;  %s876_s2 = inlined_call_operand.vmem [shape: f32[1,64], index: 2, kind: input, shape index: {}]   ;;  %s877_s4 = inlined_call_operand.vmem [shape: f32[1,64], index: 4, kind: input, shape index: {}]   ;;  %s878_s6 = inlined_call_operand.vmem [shape: f32[1,2], index: 6, kind: input, shape index: {}]   ;;  %s879_s7 = inlined_call_operand.vmem [shape: f32[64,2], index: 7, kind: output, shape index: {}]  }
   0x1   :  { %v49_v0 = vld [vmem:[%s872_s1 + $0x78] sm:$0xff]  ;;  %v48_v1 = vld [vmem:[%s872_s1 + $0x70] sm:$0xff]  ;;  %v47_v2 = vld [vmem:[%s872_s1 + $0x68] sm:$0xff] }
   0x2   :  { %555 = vmatprep.subr.mxu0 %v49_v0  ;;  %v46_v3 = vld [vmem:[%s872_s1 + $0x60] sm:$0xff]  ;;  %v45_v5 = vld [vmem:[%s872_s1 + $0x58] sm:$0xff]  ;;  %v44_v6 = vld [vmem:[%s872_s1 + $0x50] sm:$0xff] }
   0x3   :  { %556 = vmatpush3.msra.mxu0 %v49_v0  ;;  %v26_v4 = vld [vmem:[%s873_s0] sm:$0xff]  ;;  %v177_v7 = vld [vmem:[%s874_s3 + $0x38] sm:$0xff]  ;;  %v176_v8 = vld [vmem:[%s874_s3 + $0x30] sm:$0xff] }
   0x4   :  { %557 = vmatprep.subr.mxu0 %v48_v1  ;;  %587 = vmatprep.mubr.f32.mxu0 %v26_v4  ;;  %v43_v9 = vld [vmem:[%s872_s1 + $0x48] sm:$0xff]  ;;  %v42_v11 = vld [vmem:[%s872_s1 + $0x40] sm:$0xff]  ;;  %v41_v13 = vld [vmem:[%s872_s1 + $0x38] sm:$0xff] }
   0x5   :  { %558 = vmatpush3.msra.mxu0 %v48_v1  ;;  %599 = vmatprep.subr.mxu1 %v177_v7  ;;  %v175_v10 = vld [vmem:[%s874_s3 + $0x28] sm:$0xff]  ;;  %v174_v12 = vld [vmem:[%s874_s3 + $0x20] sm:$0xff]  ;;  %v40_v14 = vld [vmem:[%s872_s1 + $0x30] sm:$0xff] }
   0x6   :  { %559 = vmatprep.subr.mxu0 %v47_v2  ;;  %600 = vmatpush3.msra.mxu1 %v177_v7  ;;  %v39_v15 = vld [vmem:[%s872_s1 + $0x28] sm:$0xff]  ;;  %v38_v16 = vld [vmem:[%s872_s1 + $0x20] sm:$0xff]  ;;  %v37_v17 = vld [vmem:[%s872_s1 + $0x18] sm:$0xff] }
   0x7   :  { %560 = vmatpush3.msra.mxu0 %v47_v2  ;;  %601 = vmatprep.subr.mxu1 %v176_v8  ;;  %v36_v18 = vld [vmem:[%s872_s1 + $0x10] sm:$0xff]  ;;  %v35_v19 = vld [vmem:[%s872_s1 + $0x8] sm:$0xff]  ;;  %v34_v20 = vld [vmem:[%s872_s1] sm:$0xff] }
   0x8   :  { %561 = vmatprep.subr.mxu0 %v46_v3  ;;  %602 = vmatpush3.msra.mxu1 %v176_v8  ;;  %v27_v21 = vld [vmem:[%s873_s0 + $0x8] sm:$0xff]  ;;  %v28_v22 = vld [vmem:[%s873_s0 + $0x10] sm:$0xff]  ;;  %v29_v23 = vld [vmem:[%s873_s0 + $0x18] sm:$0xff] }
   0x9   :  { %562 = vmatpush3.msra.mxu0 %v46_v3  ;;  %603 = vmatprep.subr.mxu1 %v175_v10  ;;  %v30_v24 = vld [vmem:[%s873_s0 + $0x20] sm:$0xff]  ;;  %v31_v25 = vld [vmem:[%s873_s0 + $0x28] sm:$0xff]  ;;  %v32_v26 = vld [vmem:[%s873_s0 + $0x30] sm:$0xff] }
   0xa   :  { %563 = vmatprep.subr.mxu0 %v45_v5  ;;  %604 = vmatpush3.msra.mxu1 %v175_v10  ;;  %v33_v27 = vld [vmem:[%s873_s0 + $0x38] sm:$0xff]  ;;  %v172_v29 = vld [vmem:[%s874_s3 + $0x10] sm:$0xff]  ;;  %v171_v30 = vld [vmem:[%s874_s3 + $0x8] sm:$0xff] }
   0xb   :  { %564 = vmatpush3.msra.mxu0 %v45_v5  ;;  %605 = vmatprep.subr.mxu1 %v174_v12  ;;  %v173_v28 = vld [vmem:[%s874_s3 + $0x18] sm:$0xff]  ;;  %v170_v31 = vld [vmem:[%s874_s3] sm:$0xff]  ;;  %v329_v44 = vld [vmem:[%s875_s5 + $0x30] sm:$0xff] }
   0xc   :  { %565 = vmatprep.subr.mxu0 %v44_v6  ;;  %606 = vmatpush3.msra.mxu1 %v174_v12  ;;  %v330_v32 = vld [vmem:[%s875_s5 + $0x38] sm:$0xff]  ;;  %v480_v33 = vld [vmem:[%s876_s2] ss:$0 sm:$0xff]  ;;  %v328_v47 = vld [vmem:[%s875_s5 + $0x28] sm:$0xff] }
   0xd   :  { %566 = vmatpush3.msra.mxu0 %v44_v6  ;;  %607 = vmatprep.subr.mxu1 %v173_v28  ;;  %v327_v52 = vld [vmem:[%s875_s5 + $0x20] sm:$0xff]  ;;  %v326_v55 = vld [vmem:[%s875_s5 + $0x18] sm:$0xff]  ;;  %v325_v62 = vld [vmem:[%s875_s5 + $0x10] sm:$0xff] }
   0xe   :  { %567 = vmatprep.subr.mxu0 %v43_v9  ;;  %608 = vmatpush3.msra.mxu1 %v173_v28  ;;  %v324_v63 = vld [vmem:[%s875_s5 + $0x8] sm:$0xff]  ;;  %v323_v0 = vld [vmem:[%s875_s5] sm:$0xff] }
   0xf   :  { %568 = vmatpush3.msra.mxu0 %v43_v9  ;;  %609 = vmatprep.subr.mxu1 %v172_v29  ;;  %v481_v1 = vld [vmem:[%s877_s4] ss:$0 sm:$0xff] }
  0x10   :  { %569 = vmatprep.subr.mxu0 %v42_v11  ;;  %610 = vmatpush3.msra.mxu1 %v172_v29 }
  0x11   :  { %570 = vmatpush3.msra.mxu0 %v42_v11  ;;  %611 = vmatprep.subr.mxu1 %v171_v30 }
  0x12   :  { %571 = vmatprep.subr.mxu0 %v41_v13  ;;  %612 = vmatpush3.msra.mxu1 %v171_v30 }
  0x13   :  { %572 = vmatpush3.msra.mxu0 %v41_v13  ;;  %613 = vmatprep.subr.mxu1 %v170_v31 }
  0x14   :  { %573 = vmatprep.subr.mxu0 %v40_v14  ;;  %614 = vmatpush3.msra.mxu1 %v170_v31 }
  0x15   :  { %574 = vmatpush3.msra.mxu0 %v40_v14  ;;  %627 = vmatprep.subr.mxu1 %v330_v32 }
  0x16   :  { %575 = vmatprep.subr.mxu0 %v39_v15 }
  0x17   :  { %576 = vmatpush3.msra.mxu0 %v39_v15 }
  0x18   :  { %577 = vmatprep.subr.mxu0 %v38_v16 }
  0x19   :  { %578 = vmatpush3.msra.mxu0 %v38_v16 }
  0x1a   :  { %579 = vmatprep.subr.mxu0 %v37_v17 }
  0x1b   :  { %580 = vmatpush3.msra.mxu0 %v37_v17 }
  0x1c   :  { %581 = vmatprep.subr.mxu0 %v36_v18 }
  0x1d   :  { %582 = vmatpush3.msra.mxu0 %v36_v18 }
  0x1e   :  { %583 = vmatprep.subr.mxu0 %v35_v19 }
  0x1f   :  { %584 = vmatpush3.msra.mxu0 %v35_v19 }
  0x20   :  { %585 = vmatprep.subr.mxu0 %v34_v20 }
  0x21   :  { %586 = vmatpush3.msra.mxu0 %v34_v20 }
  0x22   :  { %588 = vmatmul.mubr.f32.vlgmr.msra.gmra.mxu0 %v27_v21 }
  0x23   :  { %590 = vmatprep.mubr.f32.mxu0 %v28_v22 }
  0x26   :  { %591 = vmatmul.mubr.f32.gmra.mxu0 %v29_v23 }
  0x27   :  { %593 = vmatprep.mubr.f32.mxu0 %v30_v24 }
  0x2a   :  { %594 = vmatmul.mubr.f32.gmra.mxu0 %v31_v25 }
  0x2b   :  { %596 = vmatprep.mubr.f32.mxu0 %v32_v26  ;;  %v490_v26 = vld [vmem:[%s878_s6] ss:$0 sm:$0xff] }
  0x2e   :  { %597 = vmatmul.mubr.f32.gmra.mxu0 %v33_v27 }
  0xe2   :  { %v589_v34 = vpop.f32.mrf.mxu0 }
  0xe3   :  { %v129_v35 = vadd.f32 %v589_v34, %v480_v33 }
  0xe4   :  { %v123_v36 = vpop.f32.mrf.mxu0 }
  0xe5   :  { %v124_v37 = vadd.f32 %v480_v33, %v123_v36  ;;  %v163_v40 = vmax.f32 %v129_v35, 0.0 }
  0xe6   :  { %v592_v38 = vpop.f32.mrf.mxu0 }
  0xe7   :  { %v162_v39 = vmax.f32 %v124_v37, 0.0  ;;  %v139_v41 = vadd.f32 %v592_v38, %v480_v33 }
  0xe8   :  { %v133_v42 = vpop.f32.mrf.mxu0 }
  0xe9   :  { %v134_v43 = vadd.f32 %v480_v33, %v133_v42  ;;  %615 = vmatprep.mubr.msk.f32.mxu1 %vm185_vm0, %v162_v39  ;;  %v165_v48 = vmax.f32 %v139_v41, 0.0 }
  0xea   :  { %v595_v45 = vpop.f32.mrf.mxu0  ;;  %616 = vmatmul.mubr.msk.f32.vlgmr.msra.gmra.mxu1 %vm185_vm0, %v163_v40 }
  0xeb   :  { %v164_v46 = vmax.f32 %v134_v43, 0.0  ;;  %628 = vmatpush3.msra.mxu1 %v330_v32  ;;  %v149_v49 = vadd.f32 %v595_v45, %v480_v33 }
  0xec   :  { %v143_v50 = vpop.f32.mrf.mxu0  ;;  %629 = vmatprep.subr.mxu1 %v329_v44 }
  0xed   :  { %v144_v51 = vadd.f32 %v480_v33, %v143_v50  ;;  %618 = vmatprep.mubr.msk.f32.mxu1 %vm185_vm0, %v164_v46  ;;  %630 = vmatpush3.msra.mxu1 %v329_v44  ;;  %v167_v56 = vmax.f32 %v149_v49, 0.0 }
  0xee   :  { %v598_v53 = vpop.f32.mrf.mxu0  ;;  %619 = vmatmul.mubr.msk.f32.gmra.mxu1 %vm185_vm0, %v165_v48  ;;  %631 = vmatprep.subr.mxu1 %v328_v47 }
  0xef   :  { %v166_v54 = vmax.f32 %v144_v51, 0.0  ;;  %632 = vmatpush3.msra.mxu1 %v328_v47  ;;  %v159_v57 = vadd.f32 %v598_v53, %v480_v33 }
  0xf0   :  { %v153_v58 = vpop.f32.mrf.mxu0  ;;  %633 = vmatprep.subr.mxu1 %v327_v52 }
  0xf1   :  { %v154_v59 = vadd.f32 %v480_v33, %v153_v58  ;;  %621 = vmatprep.mubr.msk.f32.mxu1 %vm185_vm0, %v166_v54  ;;  %634 = vmatpush3.msra.mxu1 %v327_v52  ;;  %v169_v61 = vmax.f32 %v159_v57, 0.0 }
  0xf2   :  { %622 = vmatmul.mubr.msk.f32.gmra.mxu1 %vm185_vm0, %v167_v56  ;;  %635 = vmatprep.subr.mxu1 %v326_v55 }
  0xf3   :  { %v168_v60 = vmax.f32 %v154_v59, 0.0  ;;  %636 = vmatpush3.msra.mxu1 %v326_v55 }
  0xf4   :  { %637 = vmatprep.subr.mxu1 %v325_v62 }
  0xf5   :  { %624 = vmatprep.mubr.msk.f32.mxu1 %vm185_vm0, %v168_v60  ;;  %638 = vmatpush3.msra.mxu1 %v325_v62 }
  0xf6   :  { %625 = vmatmul.mubr.msk.f32.gmra.mxu1 %vm185_vm0, %v169_v61  ;;  %639 = vmatprep.subr.mxu1 %v324_v63 }
  0xf7   :  { %640 = vmatpush3.msra.mxu1 %v324_v63 }
  0xf8   :  { %641 = vmatprep.subr.mxu1 %v323_v0 }
  0xf9   :  { %642 = vmatpush3.msra.mxu1 %v323_v0 }
 0x1aa   :  { %v617_v2 = vpop.f32.mrf.mxu1 }
 0x1ab   :  { %v282_v3 = vadd.f32 %v617_v2, %v481_v1 }
 0x1ac   :  { %v276_v4 = vpop.f32.mrf.mxu1 }
 0x1ad   :  { %v277_v5 = vadd.f32 %v481_v1, %v276_v4  ;;  %v316_v8 = vmax.f32 %v282_v3, 0.0 }
 0x1ae   :  { %v620_v6 = vpop.f32.mrf.mxu1 }
 0x1af   :  { %v315_v7 = vmax.f32 %v277_v5, 0.0  ;;  %v292_v9 = vadd.f32 %v620_v6, %v481_v1 }
 0x1b0   :  { %v286_v10 = vpop.f32.mrf.mxu1 }
 0x1b1   :  { %v287_v11 = vadd.f32 %v481_v1, %v286_v10  ;;  %643 = vmatprep.mubr.msk.f32.mxu1 %vm185_vm0, %v315_v7  ;;  %v318_v14 = vmax.f32 %v292_v9, 0.0 }
 0x1b2   :  { %v623_v12 = vpop.f32.mrf.mxu1  ;;  %644 = vmatmul.mubr.msk.f32.vlgmr.msra.gmra.mxu1 %vm185_vm0, %v316_v8 }
 0x1b3   :  { %v317_v13 = vmax.f32 %v287_v11, 0.0  ;;  %v302_v15 = vadd.f32 %v623_v12, %v481_v1 }
 0x1b4   :  { %v296_v16 = vpop.f32.mrf.mxu1 }
 0x1b5   :  { %v297_v17 = vadd.f32 %v481_v1, %v296_v16  ;;  %646 = vmatprep.mubr.msk.f32.mxu1 %vm185_vm0, %v317_v13  ;;  %v320_v20 = vmax.f32 %v302_v15, 0.0 }
 0x1b6   :  { %v626_v18 = vpop.f32.mrf.mxu1  ;;  %647 = vmatmul.mubr.msk.f32.gmra.mxu1 %vm185_vm0, %v318_v14 }
 0x1b7   :  { %v319_v19 = vmax.f32 %v297_v17, 0.0  ;;  %v312_v21 = vadd.f32 %v626_v18, %v481_v1 }
 0x1b8   :  { %v306_v22 = vpop.f32.mrf.mxu1 }
 0x1b9   :  { %v307_v23 = vadd.f32 %v481_v1, %v306_v22  ;;  %649 = vmatprep.mubr.msk.f32.mxu1 %vm185_vm0, %v319_v19  ;;  %v322_v25 = vmax.f32 %v312_v21, 0.0 }
 0x1ba   :  { %650 = vmatmul.mubr.msk.f32.gmra.mxu1 %vm185_vm0, %v320_v20 }
 0x1bb   :  { %v321_v24 = vmax.f32 %v307_v23, 0.0 }
 0x1bd   :  { %652 = vmatprep.mubr.msk.f32.mxu1 %vm185_vm0, %v321_v24 }
 0x1be   :  { %653 = vmatmul.mubr.msk.f32.gmra.mxu1 %vm185_vm0, %v322_v25 }
 0x272   :  { %v645_v27 = vpop.f32.mrf.mxu1 }
 0x273   :  { %v434_v28 = vadd.f32 %v645_v27, %v490_v26 }
 0x274   :  { %v428_v29 = vpop.f32.mrf.mxu1 }
 0x275   :  { %469 = vst.msk [vmem:[%s879_s7 + $0x8] sm:$0xff] %vm467_vm1, %v434_v28  ;;  %v429_v30 = vadd.f32 %v490_v26, %v428_v29 }
 0x276   :  { %v648_v31 = vpop.f32.mrf.mxu1 }
 0x277   :  { %468 = vst.msk [vmem:[%s879_s7] sm:$0xff] %vm467_vm1, %v429_v30  ;;  %v444_v32 = vadd.f32 %v648_v31, %v490_v26 }
 0x278   :  { %v438_v33 = vpop.f32.mrf.mxu1 }
 0x279   :  { %471 = vst.msk [vmem:[%s879_s7 + $0x18] sm:$0xff] %vm467_vm1, %v444_v32  ;;  %v439_v34 = vadd.f32 %v490_v26, %v438_v33 }
 0x27a   :  { %v651_v35 = vpop.f32.mrf.mxu1 }
 0x27b   :  { %470 = vst.msk [vmem:[%s879_s7 + $0x10] sm:$0xff] %vm467_vm1, %v439_v34  ;;  %v454_v36 = vadd.f32 %v651_v35, %v490_v26 }
 0x27c   :  { %v448_v37 = vpop.f32.mrf.mxu1 }
 0x27d   :  { %473 = vst.msk [vmem:[%s879_s7 + $0x28] sm:$0xff] %vm467_vm1, %v454_v36  ;;  %v449_v38 = vadd.f32 %v490_v26, %v448_v37 }
 0x27e   :  { %v654_v39 = vpop.f32.mrf.mxu1 }
 0x27f   :  { %472 = vst.msk [vmem:[%s879_s7 + $0x20] sm:$0xff] %vm467_vm1, %v449_v38  ;;  %v464_v40 = vadd.f32 %v654_v39, %v490_v26 }
 0x280   :  { %v458_v41 = vpop.f32.mrf.mxu1 }
 0x281   :  { %475 = vst.msk [vmem:[%s879_s7 + $0x38] sm:$0xff] %vm467_vm1, %v464_v40  ;;  %v459_v42 = vadd.f32 %v490_v26, %v458_v41 }
 0x283   :  { %474 = vst.msk [vmem:[%s879_s7 + $0x30] sm:$0xff] %vm467_vm1, %v459_v42 }

</bundles_post_ra>
